<compile_context>
chip_gen: v7x
topology: tpu7x:2x2x1
jax: 0.10.0
libtpu: 0.0.40
codegen_flags: <defaults>
</compile_context>

<pallas_src>
import functools
from dataclasses import dataclass
from typing import Dict, Union

import jax
import jax.numpy as jnp
from jax.experimental import pallas as pl
from jax.experimental.pallas import tpu as pltpu


@dataclass
class EffectParam:
    min_val: float
    max_val: float
    default: float = None


# ----------------------------------------------------------------------------
# Fused Pallas kernel: identity audio "process" + normalized->DSP param map.
#   dsp = min + (max - min) * norm
# ----------------------------------------------------------------------------
def _fused_process_kernel(x_ref, norm_ref, consts_ref, y_ref, mapped_ref):
    # Audio pass-through (NullEffect is an identity effect).  This is the
    # dominant HBM traffic; the parameter map below is free filler.
    y_ref[...] = x_ref[...]

    # Map normalized params once per batch tile (only on the first sample-axis
    # grid step); consts_ref row 0 = min, row 1 = scale.
    @pl.when(pl.program_id(1) == 0)
    def _():
        consts = consts_ref[...]          # (2, P) f32
        mn = consts[0:1, :]               # (1, P)
        sc = consts[1:2, :]               # (1, P)
        mapped_ref[...] = mn + sc * norm_ref[...]


def _pick_tiles(batch: int, flat: int, itemsize: int,
                per_tile_budget_bytes: int = 8 << 20):
    """Pick (tile_b, tile_f) for a [batch, flat] lane-dense slab.

    Constraints:
      * tile_f divides `flat` and is a multiple of 128 (or the full extent),
      * tile_b divides `batch` and is a multiple of 8 (or the full extent),
      * tile bytes stay <= ~8 MiB so the double-buffered x+y footprint is
        ~32 MiB (< v7x's 64 MiB physical VMEM, < the explicit 48 MiB limit).
    """
    tile_f = flat
    while (tile_f > 128 and tile_f % 2 == 0 and (tile_f // 2) % 128 == 0
           and tile_f * itemsize > per_tile_budget_bytes):
        tile_f //= 2

    tile_b = batch
    while (tile_b > 8 and tile_b % 2 == 0 and (tile_b // 2) % 8 == 0
           and tile_b * tile_f * itemsize > per_tile_budget_bytes):
        tile_b //= 2

    # Prefer >= 2 grid steps on the parallel (batch) axis when B allows it
    # without violating the (8,128) sublane rule — feeds v7x's two TCs.
    if batch // tile_b == 1 and tile_b % 16 == 0:
        tile_b //= 2

    return tile_b, tile_f


@functools.partial(jax.jit, static_argnames=("mins", "scale"))
def _null_process_fused(x: jnp.ndarray, norm_bp: jnp.ndarray,
                        mins, scale):
    """One fused pallas_call: y = x (identity effect), mapped = affine(norm)."""
    B = x.shape[0]
    F = 1
    for d in x.shape[1:]:
        F *= d
    P = norm_bp.shape[-1]

    # Lane-dense presentation of the audio slab: [B, C*S].
    x2d = x.reshape(B, F)
    norm_bp = norm_bp.astype(jnp.float32)
    consts = jnp.stack([jnp.asarray(mins, jnp.float32),
                        jnp.asarray(scale, jnp.float32)], axis=0)   # (2, P)

    itemsize = jnp.dtype(x.dtype).itemsize
    tile_b, tile_f = _pick_tiles(B, F, itemsize)
    grid = (B // tile_b, F // tile_f)

    y2d, mapped = pl.pallas_call(
        _fused_process_kernel,
        out_shape=(
            jax.ShapeDtypeStruct((B, F), x.dtype),
            jax.ShapeDtypeStruct((B, P), jnp.float32),
        ),
        grid=grid,
        in_specs=[
            pl.BlockSpec((tile_b, tile_f), lambda i, j: (i, j)),
            pl.BlockSpec((tile_b, P), lambda i, j: (i, 0)),
            pl.BlockSpec((2, P), lambda i, j: (0, 0)),
        ],
        out_specs=(
            pl.BlockSpec((tile_b, tile_f), lambda i, j: (i, j)),
            pl.BlockSpec((tile_b, P), lambda i, j: (i, 0)),
        ),
        input_output_aliases={0: 0},   # y donates x2d's HBM buffer
        compiler_params=pltpu.CompilerParams(
            dimension_semantics=("parallel", "arbitrary"),
            vmem_limit_bytes=48 * 1024 * 1024),
        cost_estimate=pl.CostEstimate(
            flops=2 * B * P,
            transcendentals=0,
            bytes_accessed=2 * B * F * itemsize + 2 * B * P * 4 + 2 * P * 4),
    )(x2d, norm_bp, consts)

    return y2d.reshape(x.shape), mapped


# ----------------------------------------------------------------------------
# JAX port of ProcessorsBase
# ----------------------------------------------------------------------------
class ProcessorsBase:
    """JAX/Pallas port of diffFx ProcessorsBase (parameter handling + mapping)."""

    def __init__(self, sample_rate: int = 44100,
                 param_range: Dict[str, EffectParam] = None):
        self.sample_rate = sample_rate
        self.params: Dict[str, EffectParam] = {}
        self._register_default_parameters()
        if param_range:
            self.params.update(param_range)
        self._refresh_param_constants()

    def _register_default_parameters(self):
        pass

    # --- trace-time parameter constants --------------------------------------
    def _refresh_param_constants(self):
        mins, maxs = [], []
        for name, p in self.params.items():
            if float(p.max_val) == float(p.min_val):
                raise ValueError(
                    f"Parameter '{name}' has min_val == max_val "
                    f"({p.min_val}); demap would divide by zero.")
            mins.append(float(p.min_val))
            maxs.append(float(p.max_val))
        self._min_const = tuple(mins)
        self._scale_const = tuple(mx - mn for mx, mn in zip(maxs, mins))
        if mins:
            self._mins = jnp.asarray(mins, jnp.float32)
            self._scale = jnp.asarray(self._scale_const, jnp.float32)
            self._inv_scale = jnp.asarray(
                [1.0 / s for s in self._scale_const], jnp.float32)
        else:
            self._mins = self._scale = self._inv_scale = jnp.zeros((0,), jnp.float32)

    # --- helpers --------------------------------------------------------------
    def _tensor_to_dict(self, tensor: jnp.ndarray) -> Dict[str, jnp.ndarray]:
        assert tensor.ndim == 2, 'Expected 2D tensor'
        assert tensor.shape[1] == len(self.params), (
            f'Expected {len(self.params)} parameters, got {tensor.shape[1]}')
        return {name: tensor[:, i] for i, name in enumerate(self.params.keys())}

    def _dict_to_tensor(self, d: Dict[str, jnp.ndarray]) -> jnp.ndarray:
        names = list(self.params.keys())
        return jnp.stack([jnp.asarray(d[n], jnp.float32) for n in names], axis=-1)

    # --- parameter (de)mapping: plain jnp, fused by XLA, constants baked -----
    def map_parameters_array(self, norm_bp: jnp.ndarray) -> jnp.ndarray:
        """[B, P] normalized -> [B, P] DSP values.  dsp = min + scale * norm."""
        return self._mins[None, :] + self._scale[None, :] * norm_bp

    def demap_parameters_array(self, dsp_bp: jnp.ndarray) -> jnp.ndarray:
        """[B, P] DSP -> [B, P] normalized.  norm = (dsp - min) * (1/scale)."""
        return (dsp_bp - self._mins[None, :]) * self._inv_scale[None, :]

    def map_parameters(self, norm_params: Dict[str, jnp.ndarray]) -> Dict[str, jnp.ndarray]:
        mapped = self.map_parameters_array(self._dict_to_tensor(norm_params))
        return {n: mapped[:, i] for i, n in enumerate(self.params.keys())}

    def demap_parameters(self, dsp_params: Dict[str, jnp.ndarray]) -> Dict[str, jnp.ndarray]:
        demapped = self.demap_parameters_array(self._dict_to_tensor(dsp_params))
        return {n: demapped[:, i] for i, n in enumerate(self.params.keys())}

    def create_dsp_params_batch(self, params_dict: Dict[str, float],
                                batch_size: int = 1) -> Dict[str, jnp.ndarray]:
        batched = {}
        for name, value in params_dict.items():
            if name not in self.params:
                raise KeyError(f"Parameter '{name}' not registered in effect processor")
            info = self.params[name]
            if value < info.min_val or value > info.max_val:
                raise ValueError(
                    f"Parameter '{name}' value {value} is outside valid range "
                    f"[{info.min_val}, {info.max_val}]")
            batched[name] = jnp.full((batch_size,), value, dtype=jnp.float32)
        return batched

    # --- forward --------------------------------------------------------------
    def __call__(self, x, norm_params=None, dsp_params=None):
        return self.forward(x, norm_params, dsp_params)

    def forward(self, x: jnp.ndarray,
                norm_params: Union[jnp.ndarray, None] = None,
                dsp_params: Union[Dict[str, Union[float, jnp.ndarray]], None] = None):
        params_dict, dsp_params_dict = None, None
        batch_size = x.shape[0]
        if norm_params is not None:
            assert norm_params.ndim == 2, 'Expected 2D tensor'
            params_dict = self._tensor_to_dict(norm_params)
        if dsp_params is not None:
            dsp_params_dict = {}
            for name, value in dsp_params.items():
                if name not in self.params:
                    raise KeyError(f'Unknown parameter: {name}')
                if isinstance(value, (int, float)):
                    dsp_params_dict[name] = jnp.full((batch_size,), float(value),
                                                     dtype=jnp.float32)
                elif isinstance(value, (jnp.ndarray, jax.Array)):
                    if value.ndim == 0:
                        dsp_params_dict[name] = jnp.broadcast_to(value, (batch_size,))
                    elif value.ndim == 1:
                        assert value.shape[0] == batch_size, (
                            f"Parameter '{name}' batch size {value.shape[0]} != {batch_size}")
                        dsp_params_dict[name] = value
                    else:
                        raise ValueError(
                            f"Parameter '{name}' has too many dimensions: {value.ndim}")
                else:
                    raise TypeError(f"Parameter '{name}' has invalid type: {type(value)}")
        return self.process(x, params_dict, dsp_params_dict)

    def process(self, x, norm_params=None, dsp_params=None):
        # TODO(synk): abstract in the PyTorch reference (NotImplementedError);
        # subclasses define the actual audio DSP.
        raise NotImplementedError

    def count_num_parameters(self):
        return len(self.params)


class NullEffect(ProcessorsBase):
    """Concrete identity effect; its process() is a single fused Pallas kernel
    (audio pass-through + normalized->DSP parameter mapping)."""

    def _register_default_parameters(self):
        self.params = {
            'frequency': EffectParam(min_val=20.0, max_val=20000.0),
            'gain_db':   EffectParam(min_val=-24.0, max_val=24.0),
            'q':         EffectParam(min_val=0.1, max_val=10.0),
            'mix':       EffectParam(min_val=0.0, max_val=1.0),
        }

    def process(self, x, norm_params=None, dsp_params=None):
        if norm_params is not None:
            names = list(self.params.keys())
            norm_bp = jnp.stack([norm_params[n] for n in names], axis=-1)  # [B, P]
            y, mapped_bp = _null_process_fused(
                x, norm_bp, self._min_const, self._scale_const)
            mapped = {n: mapped_bp[:, i] for i, n in enumerate(names)}
            return y, mapped
        # dsp_params are already in DSP ranges; identity audio pass-through.
        return x, dsp_params


# ----------------------------------------------------------------------------
if __name__ == "__main__":
    key = jax.random.PRNGKey(0)
    k_x, k_p = jax.random.split(key)

    batch, channels, samples = 2, 4, 16
    x = jax.random.normal(k_x, (batch, channels, samples), dtype=jnp.float32)
    norm_params = jax.random.uniform(k_p, (batch, 4), dtype=jnp.float32)  # [B, P]

    effect = NullEffect(sample_rate=44100)

    # --- normalized-parameter path: fused Pallas process kernel --------------
    y, mapped = effect(x, norm_params=norm_params)
    y = jax.block_until_ready(y)
    mapped = {k: jax.block_until_ready(v) for k, v in mapped.items()}

    mins = jnp.array([p.min_val for p in effect.params.values()], jnp.float32)
    maxs = jnp.array([p.max_val for p in effect.params.values()], jnp.float32)
    ref = mins[None, :] + (maxs - mins)[None, :] * norm_params
    got = jnp.stack([mapped[n] for n in effect.params.keys()], axis=-1)
    assert jnp.allclose(got, ref, rtol=1e-5, atol=1e-5), "map_parameters mismatch"
    assert jnp.allclose(y, x), "audio pass-through mismatch"
    assert y.dtype == x.dtype, "audio dtype changed"

    # --- DSP-parameter path + demap (plain jnp with baked reciprocal) --------
    dsp = {'frequency': 1000.0, 'gain_db': -6.0,
           'q': jnp.asarray(0.7, jnp.float32),
           'mix': jnp.full((batch,), 0.5, jnp.float32)}
    y2, dsp_mapped = effect(x, dsp_params=dsp)
    assert jnp.allclose(y2, x), "dsp-path pass-through mismatch"
    renorm = effect.demap_parameters(dsp_mapped)
    renorm = {k: jax.block_until_ready(v) for k, v in renorm.items()}
    renorm_stacked = jnp.stack([renorm[n] for n in effect.params.keys()], axis=-1)
    dsp_stacked = jnp.stack([dsp_mapped[n] for n in effect.params.keys()], axis=-1)
    ref_renorm = (dsp_stacked - mins[None, :]) / (maxs - mins)[None, :]
    assert jnp.allclose(renorm_stacked, ref_renorm, rtol=1e-5, atol=1e-5), \
        "demap_parameters mismatch"

    print("KERNEL_OK")
</pallas_src>

<mosaic_0001>
module attributes {stable_mosaic.version = 11 : i64} {
  func.func @_fused_process_kernel(%arg0: i32, %arg1: i32, %arg2: memref<2x64xf32, #tpu.memory_space<vmem>>, %arg3: memref<2x4xf32, #tpu.memory_space<vmem>>, %arg4: memref<2x4xf32, #tpu.memory_space<vmem>>, %arg5: memref<2x64xf32, #tpu.memory_space<vmem>>, %arg6: memref<2x4xf32, #tpu.memory_space<vmem>>) attributes {dimension_semantics = [#tpu.dimension_semantics<parallel>, #tpu.dimension_semantics<arbitrary>], iteration_bounds = array<i64: 1, 1>, scalar_prefetch = 0 : i64, scratch_operands = 0 : i64, tpu.core_type = #tpu.core_type<tc>, window_params = [{transform_indices = @transform_0, window_bounds = array<i64: 2, 64>}, {transform_indices = @transform_1, window_bounds = array<i64: 2, 4>}, {pipeline_mode = #tpu.pipeline_mode<synchronous>, transform_indices = @transform_2, window_bounds = array<i64: 2, 4>}, {transform_indices = @transform_3, window_bounds = array<i64: 2, 64>}, {transform_indices = @transform_4, window_bounds = array<i64: 2, 4>}]} {
    %c0 = arith.constant 0 : index
    %c0_0 = arith.constant 0 : index
    %0 = vector.load %arg2[%c0, %c0_0] : memref<2x64xf32, #tpu.memory_space<vmem>>, vector<2x64xf32>
    %c0_1 = arith.constant 0 : index
    %c0_2 = arith.constant 0 : index
    %1 = vector.load %arg5[%c0_1, %c0_2] : memref<2x64xf32, #tpu.memory_space<vmem>>, vector<2x64xf32>
    tpu.vector_store %arg5[%c0_1, %c0_2], %0 {strides = array<i32>} : memref<2x64xf32, #tpu.memory_space<vmem>>, vector<2x64xf32>,
    %c0_i32 = arith.constant 0 : i32
    %2 = arith.cmpi eq, %arg1, %c0_i32 : i32
    %3 = arith.extui %2 : i1 to i32
    %c0_i32_3 = arith.constant 0 : i32
    %4 = arith.cmpi ne, %3, %c0_i32_3 : i32
    scf.if %4 {
      %c0_4 = arith.constant 0 : index
      %c0_5 = arith.constant 0 : index
      %5 = vector.load %arg4[%c0_4, %c0_5] : memref<2x4xf32, #tpu.memory_space<vmem>>, vector<2x4xf32>
      %6 = vector.extract_strided_slice %5 {offsets = [0, 0], sizes = [1, 4], strides = [1, 1]} : vector<2x4xf32> to vector<1x4xf32>
      %7 = vector.extract_strided_slice %5 {offsets = [1, 0], sizes = [1, 4], strides = [1, 1]} : vector<2x4xf32> to vector<1x4xf32>
      %c0_6 = arith.constant 0 : index
      %c0_7 = arith.constant 0 : index
      %8 = vector.load %arg3[%c0_6, %c0_7] : memref<2x4xf32, #tpu.memory_space<vmem>>, vector<2x4xf32>
      %9 = vector.broadcast %7 : vector<1x4xf32> to vector<2x4xf32>
      %10 = arith.mulf %9, %8 : vector<2x4xf32>
      %11 = vector.broadcast %6 : vector<1x4xf32> to vector<2x4xf32>
      %12 = arith.addf %11, %10 : vector<2x4xf32>
      %c0_8 = arith.constant 0 : index
      %c0_9 = arith.constant 0 : index
      %13 = vector.load %arg6[%c0_8, %c0_9] : memref<2x4xf32, #tpu.memory_space<vmem>>, vector<2x4xf32>
      tpu.vector_store %arg6[%c0_8, %c0_9], %12 {strides = array<i32>} : memref<2x4xf32, #tpu.memory_space<vmem>>, vector<2x4xf32>,
    } else {
    }
    return
  }
  func.func @transform_0(%arg0: i32, %arg1: i32) -> (i32, i32) {
    %c0_i32 = arith.constant 0 : i32
    return %arg0, %arg1 : i32, i32
  }
  func.func @transform_1(%arg0: i32, %arg1: i32) -> (i32, i32) {
    %c0_i32 = arith.constant 0 : i32
    %c0_i32_0 = arith.constant 0 : i32
    return %arg0, %c0_i32 : i32, i32
  }
  func.func @transform_2(%arg0: i32, %arg1: i32) -> (i32, i32) {
    %c0_i32 = arith.constant 0 : i32
    %c0_i32_0 = arith.constant 0 : i32
    %c0_i32_1 = arith.constant 0 : i32
    return %c0_i32, %c0_i32_0 : i32, i32
  }
  func.func @transform_3(%arg0: i32, %arg1: i32) -> (i32, i32) {
    %c0_i32 = arith.constant 0 : i32
    return %arg0, %arg1 : i32, i32
  }
  func.func @transform_4(%arg0: i32, %arg1: i32) -> (i32, i32) {
    %c0_i32 = arith.constant 0 : i32
    %c0_i32_0 = arith.constant 0 : i32
    return %arg0, %c0_i32 : i32, i32
  }
}

</mosaic_0001>

<bundles_post_ra>
// kernel: _null_process_fused.1
= control target key start
LH: loop header
LB: loop body
LE: loop exit
PB: predicated region body
PF: predicated region fallthrough
CT: control target
= control target key end

     0   :  { %v26_v0 = vlaneseq  ;;  %vm18_vm0 = vcmask 517120   ;;  %s131_s0 = inlined_call_operand.vmem [shape: f32[2,64], index: 0, kind: input, shape index: {}, may-alias: {0,3}]   ;;  %s132_s1 = inlined_call_operand.vmem [shape: f32[2,4], index: 1, kind: input, shape index: {}]   ;;  %s133_s2 = inlined_call_operand.vmem [shape: f32[2,4], index: 2, kind: input, shape index: {}]   ;;  %s134_s3 = inlined_call_operand.vmem [shape: f32[2,64], index: 3, kind: output, shape index: {0}, may-alias: {0,3}]   ;;  %s135_s4 = inlined_call_operand.hbm [shape: f32[2,4], index: 4, kind: output, shape index: {1}]  }
   0x1   :  { %v17_v1 = vld [vmem:[%s131_s0] sm:$0x3] }
   0x2   :  { %10 = vsyncpa [#allocation3], 0  ;;  %v27_v2 = vshrl.u32 %v26_v0, 7  ;;  %19 = vst.msk [vmem:[%s134_s3] sm:$0x3] %vm18_vm0, %v17_v1  ;;  %s81_s23 = smov [#allocation2]  }
   0x3   :  { %v24_v3 = vld [vmem:[%s133_s2] sm:$0x3]  ;;  %s46_s0 = sshll.u32 %s81_s23, 4  ;;  %vm36_vm1 = vcmask 25600   ;;  %s47_s0 = int_to_ptr.vmem [resolvable:$true] %s46_s0 }
   0x4   :  { %v28_v4 = vsub.s32 1, %v27_v2  ;;  %v33_v5 = vsub.s32 0, %v27_v2  ;;  %v25_v6 = vld [vmem:[%s132_s1] sm:$0x3]  ;;  %s57_s3 = scalar_lea.vmem %s47_s0, 32  ;;  %p62_p1 = scmp.lt.s32.totalorder %s47_s0, %s47_s0 }
   0x5   :  { %p58_p0 = scmp.ne.s32.totalorder %s47_s0, %s57_s3  ;;  %p63_p2 = scmp.lt.s32.totalorder %s57_s3, %s57_s3 }
   0x6   :  { %v29_v7 = vrot.slane %v24_v3, %v28_v4  ;;  %v34_v8 = vrot.slane %v24_v3, %v33_v5 }
   0x7   :  { %p64_p3 = por %p63_p2, %p62_p1 }
   0x8   :  { %v30_v9 = vmul.f32 %v29_v7, %v25_v6 }
   0x9   :  { %p65_p4 = pnand %p64_p3, %p58_p0 }
   0xa   :  { %v35_v10 = vadd.f32 %v34_v8, %v30_v9 }
   0xc   :  { %37 = vst.msk [vmem:[#allocation2] sm:$0x3] %vm36_vm1, %v35_v10 }
   0xd   :  { %68 = shalt.err (!%p65_p4)
}
   0xe   :  { %s69_s1 = scalar_lea.hbm %s135_s4, 32 }
   0xf   :  { %p70_p5 = scmp.ne.s32.totalorder %s135_s4, %s69_s1  ;;  %p73_p6 = scmp.lt.u32.totalorder %s69_s1, %s135_s4 }
  0x11   :  { %p75_p7 = pnand %p73_p6, %p70_p5 }
  0x13   :  { %78 = shalt.err (!%p75_p7)
}
  0x14   :  { %49 = dma.vmem_to_hbm [thread:$0]  %s47_s0, 32, %s135_s4, [#allocation3]  }
  0x15   :  { %79 = dma.done.wait [#allocation3], 32  }
  0x16   :  { %80 = vsyncadd [#allocation3], 4294967264 }
  0x17   :  { %55 = vsyncpa [#allocation3], 1 }

</bundles_post_ra>
